<compile_context>
chip_gen: v6e
topology: v6e:2x2x1
jax: 0.10.0
libtpu: 0.0.40
codegen_flags: <defaults>
</compile_context>

<pallas_src>
import jax
import jax.numpy as jnp
from jax.experimental import pallas as pl
from jax.experimental.pallas import tpu as pltpu


def simloss_kernel(inv_ref,             # SMEM (1,)   f32  - 1/exp(temperature) (scalar prefetch)
                   text_ref,            # VMEM (TM,E) bf16 - row tile of text features
                   graph_ref,           # VMEM (B, E) bf16 - full graph features (single-buffered)
                   wt_ref, bt_ref,      # VMEM (E, P) bf16, (1, P) f32
                   wg_ref, bg_ref,      # VMEM (E, P) bf16, (1, P) f32
                   loss_ref,            # SMEM (1, 1) f32  - output
                   gembt_ref,           # VMEM (P, B) bf16 - normalized graph embeds, transposed
                   mrun_ref,            # VMEM (1, 1) f32  - running tile max for the column LSE
                   scol_ref,            # VMEM (1, B) f32  - online column exp-sum
                   acc_ref):            # SMEM (2,)   f32  - [sum(lse_rows), trace]
    i = pl.program_id(0)
    tm = text_ref.shape[0]
    B = graph_ref.shape[0]
    inv_scale = inv_ref[0]

    @pl.when(i == 0)
    def _init():
        # One-time graph projection + L2 normalize; store transposed & bf16 so
        # every later step runs a canonical (TM,P)@(P,B) bf16 matmul.
        g = jnp.dot(graph_ref[...], wg_ref[...],
                    preferred_element_type=jnp.float32) + bg_ref[...]
        # NOTE: no epsilon, matching the PyTorch reference semantics.
        g = g * jax.lax.rsqrt(jnp.sum(g * g, axis=-1, keepdims=True))
        gembt_ref[...] = jnp.transpose(g).astype(gembt_ref.dtype)
        mrun_ref[...] = jnp.full(mrun_ref.shape, -jnp.inf, mrun_ref.dtype)
        scol_ref[...] = jnp.zeros(scol_ref.shape, scol_ref.dtype)
        acc_ref[0] = jnp.float32(0.0)   # running sum of row log-sum-exps
        acc_ref[1] = jnp.float32(0.0)   # running trace (sum of diagonal logits)

    # Text projection for this row tile (bf16 MXU operands, f32 accumulate);
    # elementwise math stays f32 (v5e VPU/EUP have no bf16 path).  Fold
    # 1/exp(temperature) into the normalization multiplier so the (TM, B)
    # logits never get rescaled.
    t = jnp.dot(text_ref[...], wt_ref[...],
                preferred_element_type=jnp.float32) + bt_ref[...]
    t = t * (jax.lax.rsqrt(jnp.sum(t * t, axis=-1, keepdims=True)) * inv_scale)

    # Logits tile (TM, B): canonical bf16 matmul, f32 accumulation on the MXU.
    logits = jnp.dot(t.astype(gembt_ref.dtype), gembt_ref[...],
                     preferred_element_type=jnp.float32)

    # Row log-sum-exp with the PER-ROW max (safe for any logit scale);
    # single (TM, B) exp pass feeds both the row LSE and the column partials.
    m_row = jnp.max(logits, axis=-1, keepdims=True)                   # (TM, 1)
    e = jnp.exp(logits - m_row)                                       # (TM, B)
    lse_r = jnp.log(jnp.sum(e, axis=-1, keepdims=True)) + m_row       # (TM, 1)
    acc_ref[0] = acc_ref[0] + jnp.sum(lse_r)

    # Trace contribution: diag[r] = <t[r], graph_emb[i*tm + r]>.  Recompute this
    # tile's graph embedding rows (tm x E x P MACs, negligible vs the main
    # matmul) instead of masking the whole (TM, B) tile with iotas.
    gt = jnp.dot(graph_ref[pl.ds(i * tm, tm), :], wg_ref[...],
                 preferred_element_type=jnp.float32) + bg_ref[...]
    gt = gt * jax.lax.rsqrt(jnp.sum(gt * gt, axis=-1, keepdims=True))
    acc_ref[1] = acc_ref[1] + jnp.sum(t * gt)

    # Online column log-sum-exp across row tiles.  The per-tile contribution is
    # the same `e` rescaled by exp(m_row - m_tile) -- a (TM, 1) exp, so no
    # second full EUP pass.  (The column side uses a running tile max, which
    # the review accepted; only extreme logit-scale gaps could underflow it.)
    m_tile = jnp.max(m_row, axis=0, keepdims=True)                    # (1, 1)
    colsum = jnp.sum(e * jnp.exp(m_row - m_tile), axis=0, keepdims=True)   # (1, B)
    m_old = mrun_ref[...]
    m_new = jnp.maximum(m_old, m_tile)
    scol_ref[...] = (scol_ref[...] * jnp.exp(m_old - m_new)
                     + colsum * jnp.exp(m_tile - m_new))
    mrun_ref[...] = m_new

    @pl.when(i == pl.num_programs(0) - 1)
    def _finalize():
        lse_c = jnp.log(scol_ref[...]) + mrun_ref[...]                # (1, B)
        loss_ref[0, 0] = (acc_ref[0] + jnp.sum(lse_c)
                          - 2.0 * acc_ref[1]) / (2.0 * B)


def _pick_row_tile(batch, row_tile):
    """Largest divisor of `batch` that is a multiple of 8 and <= row_tile."""
    if batch <= row_tile:
        return batch
    for tm in range(row_tile, 7, -1):
        if batch % tm == 0 and tm % 8 == 0:
            return tm
    # TODO(synk): masked last tile for batches with no 8-aligned divisor; for
    # now fall back to a single whole-batch tile (correct, but large-B unsafe).
    return batch


def simloss_pallas(text_features, graph_features, w_t, b_t, w_g, b_g, temperature,
                   *, row_tile=256):
    B, E = text_features.shape
    P = w_t.shape[1]
    tm = _pick_row_tile(B, row_tile)
    grid = (B // tm,)

    f32, bf16 = jnp.float32, jnp.bfloat16
    # exp(temperature) of a single scalar parameter: do it once outside the kernel.
    inv_scale = jnp.exp(-jnp.asarray(temperature, f32)).reshape(1)

    const = dict(pipeline_mode=pl.Buffered(1))    # never-changing blocks: single buffer
    in_specs = [
        pl.BlockSpec((tm, E), lambda i, inv: (i, 0)),              # text row tile
        pl.BlockSpec((B, E), lambda i, inv: (0, 0), **const),      # graph features (resident)
        pl.BlockSpec((E, P), lambda i, inv: (0, 0), **const),      # w_t
        pl.BlockSpec((1, P), lambda i, inv: (0, 0), **const),      # b_t
        pl.BlockSpec((E, P), lambda i, inv: (0, 0), **const),      # w_g
        pl.BlockSpec((1, P), lambda i, inv: (0, 0), **const),      # b_g
    ]
    out_specs = pl.BlockSpec((1, 1), lambda i, inv: (0, 0),
                             memory_space=pltpu.MemorySpace.SMEM)
    scratch_shapes = [
        pltpu.VMEM((P, B), bf16),  # normalized graph embeddings (transposed)
        pltpu.VMEM((1, 1), f32),   # running column-LSE max
        pltpu.VMEM((1, B), f32),   # online column exp-sum
        pltpu.SMEM((2,), f32),     # [sum(lse_rows), trace]
    ]

    loss = pl.pallas_call(
        simloss_kernel,
        out_shape=jax.ShapeDtypeStruct((1, 1), f32),
        grid_spec=pltpu.PrefetchScalarGridSpec(
            num_scalar_prefetch=1,
            grid=grid,
            in_specs=in_specs,
            out_specs=out_specs,
            scratch_shapes=scratch_shapes),
        compiler_params=pltpu.CompilerParams(
            # Row tiles carry the online column-LSE accumulator -> sequential.
            # TODO(synk): split the row axis across v7x's two TensorCores with
            # per-core column partials and a small combine step.
            dimension_semantics=("arbitrary",),
            # Headroom under v7x's 64 MiB physical VMEM; raise on v6e (128 MiB).
            vmem_limit_bytes=48 * 1024 * 1024),
    )(inv_scale,
      text_features.astype(bf16),
      graph_features.astype(bf16),
      w_t.astype(bf16), b_t.reshape(1, P).astype(f32),
      w_g.astype(bf16), b_g.reshape(1, P).astype(f32))
    return loss[0, 0]


def simloss_reference(text_features, graph_features, w_t, b_t, w_g, b_g, temperature):
    graph_emb = graph_features @ w_g + b_g
    graph_emb = graph_emb / jnp.linalg.norm(graph_emb, axis=-1, keepdims=True)
    text_emb = text_features @ w_t + b_t
    text_emb = text_emb / jnp.linalg.norm(text_emb, axis=-1, keepdims=True)
    logits = text_emb @ graph_emb.T / jnp.exp(temperature)
    idx = jnp.arange(logits.shape[0])

    def ce(lg):
        lse = jax.nn.logsumexp(lg, axis=-1)
        return jnp.mean(lse - lg[idx, idx])

    return (ce(logits) + ce(logits.T)) / 2.0


if __name__ == "__main__":
    B = 8       # batch
    E = 32      # embedding_dim
    P = 256     # projection_dim (module default)

    key = jax.random.PRNGKey(0)
    k1, k2, k3, k4, k5, k6 = jax.random.split(key, 6)
    text_features = jax.random.normal(k1, (B, E), jnp.float32)
    graph_features = jax.random.normal(k2, (B, E), jnp.float32)
    # Deterministic synthetic parameters (weights stored transposed: (E, P)).
    w_t = jax.random.normal(k3, (E, P), jnp.float32) * 0.05
    b_t = jax.random.normal(k4, (P,), jnp.float32) * 0.01
    w_g = jax.random.normal(k5, (E, P), jnp.float32) * 0.05
    b_g = jax.random.normal(k6, (P,), jnp.float32) * 0.01
    temperature = jnp.float32(0.07)

    loss = simloss_pallas(text_features, graph_features, w_t, b_t, w_g, b_g, temperature)
    jax.block_until_ready(loss)

    # f32 reference on bf16-rounded inputs (the kernel feeds the MXU in bf16 and
    # additionally rounds the normalized embeddings to bf16 for the logits
    # matmul), hence the modest tolerance on the scalar loss.
    rnd = lambda x: x.astype(jnp.bfloat16).astype(jnp.float32)
    ref = simloss_reference(rnd(text_features), rnd(graph_features),
                            rnd(w_t), b_t, rnd(w_g), b_g, temperature)
    assert jnp.allclose(loss, ref, rtol=2e-2, atol=2e-2), (loss, ref)

    print("KERNEL_OK")
</pallas_src>

<mosaic_0001>
module attributes {stable_mosaic.version = 11 : i64} {
  func.func @simloss_kernel(%arg0: i32, %arg1: memref<1xf32, #tpu.memory_space<smem>>, %arg2: memref<8x32xbf16, #tpu.memory_space<vmem>>, %arg3: memref<8x32xbf16, #tpu.memory_space<vmem>>, %arg4: memref<32x256xbf16, #tpu.memory_space<vmem>>, %arg5: memref<1x256xf32, #tpu.memory_space<vmem>>, %arg6: memref<32x256xbf16, #tpu.memory_space<vmem>>, %arg7: memref<1x256xf32, #tpu.memory_space<vmem>>, %arg8: memref<1x1xf32, #tpu.memory_space<smem>>, %arg9: memref<256x8xbf16, #tpu.memory_space<vmem>>, %arg10: memref<1x1xf32, #tpu.memory_space<vmem>>, %arg11: memref<1x8xf32, #tpu.memory_space<vmem>>, %arg12: memref<2xf32, #tpu.memory_space<smem>>) attributes {dimension_semantics = [#tpu.dimension_semantics<arbitrary>], iteration_bounds = array<i64: 1>, scalar_prefetch = 1 : i64, scratch_operands = 4 : i64, tpu.core_type = #tpu.core_type<tc>, window_params = [{transform_indices = @transform_0, window_bounds = array<i64: 8, 32>}, {pipeline_mode = #tpu.pipeline_mode<synchronous>, transform_indices = @transform_1, window_bounds = array<i64: 8, 32>}, {pipeline_mode = #tpu.pipeline_mode<synchronous>, transform_indices = @transform_2, window_bounds = array<i64: 32, 256>}, {pipeline_mode = #tpu.pipeline_mode<synchronous>, transform_indices = @transform_3, window_bounds = array<i64: 1, 256>}, {pipeline_mode = #tpu.pipeline_mode<synchronous>, transform_indices = @transform_4, window_bounds = array<i64: 32, 256>}, {pipeline_mode = #tpu.pipeline_mode<synchronous>, transform_indices = @transform_5, window_bounds = array<i64: 1, 256>}, {transform_indices = @transform_6, window_bounds = array<i64: 1, 1>}]} {
    %c0 = arith.constant 0 : index
    %0 = memref.load %arg1[%c0] : memref<1xf32, #tpu.memory_space<smem>>
    %c0_i32 = arith.constant 0 : i32
    %1 = arith.cmpi eq, %arg0, %c0_i32 : i32
    %2 = arith.extui %1 : i1 to i32
    %c0_i32_0 = arith.constant 0 : i32
    %3 = arith.cmpi ne, %2, %c0_i32_0 : i32
    scf.if %3 {
      %c0_37 = arith.constant 0 : index
      %c0_38 = arith.constant 0 : index
      %85 = vector.load %arg3[%c0_37, %c0_38] : memref<8x32xbf16, #tpu.memory_space<vmem>>, vector<8x32xbf16>
      %c0_39 = arith.constant 0 : index
      %c0_40 = arith.constant 0 : index
      %86 = vector.load %arg6[%c0_39, %c0_40] : memref<32x256xbf16, #tpu.memory_space<vmem>>, vector<32x256xbf16>
      %cst_41 = arith.constant dense<0.000000e+00> : vector<8x256xf32>
      %87 = tpu.matmul %85, %86, %cst_41 {dimension_numbers = #tpu.dot_dimension_numbers<[1], [0], [0], [1], [0, 0, 1, 1], [], []>} : vector<8x32xbf16>, vector<32x256xbf16>, vector<8x256xf32> -> vector<8x256xf32>
      %c0_42 = arith.constant 0 : index
      %c0_43 = arith.constant 0 : index
      %88 = vector.load %arg7[%c0_42, %c0_43] : memref<1x256xf32, #tpu.memory_space<vmem>>, vector<1x256xf32>
      %89 = vector.broadcast %88 : vector<1x256xf32> to vector<8x256xf32>
      %90 = arith.addf %87, %89 : vector<8x256xf32>
      %91 = arith.mulf %90, %90 : vector<8x256xf32>
      %cst_44 = arith.constant dense<0.000000e+00> : vector<8xf32>
      %92 = vector.multi_reduction <add>, %91, %cst_44 [1] : vector<8x256xf32> to vector<8xf32>
      %93 = vector.shape_cast %92 : vector<8xf32> to vector<8x1xf32>
      %94 = math.rsqrt %93 : vector<8x1xf32>
      %95 = vector.broadcast %94 : vector<8x1xf32> to vector<8x256xf32>
      %96 = arith.mulf %90, %95 : vector<8x256xf32>
      %97 = tpu.transpose %96, [1, 0] : vector<8x256xf32> -> vector<256x8xf32>
      %98 = arith.truncf %97 : vector<256x8xf32> to vector<256x8xbf16>
      %c0_45 = arith.constant 0 : index
      %c0_46 = arith.constant 0 : index
      %99 = vector.load %arg9[%c0_45, %c0_46] : memref<256x8xbf16, #tpu.memory_space<vmem>>, vector<256x8xbf16>
      tpu.vector_store %arg9[%c0_45, %c0_46], %98 {strides = array<i32>} : memref<256x8xbf16, #tpu.memory_space<vmem>>, vector<256x8xbf16>,
      %cst_47 = arith.constant 0xFF800000 : f32
      %100 = vector.broadcast %cst_47 : f32 to vector<1x1xf32>
      %c0_48 = arith.constant 0 : index
      %c0_49 = arith.constant 0 : index
      %101 = vector.load %arg10[%c0_48, %c0_49] : memref<1x1xf32, #tpu.memory_space<vmem>>, vector<1x1xf32>
      tpu.vector_store %arg10[%c0_48, %c0_49], %100 {strides = array<i32>} : memref<1x1xf32, #tpu.memory_space<vmem>>, vector<1x1xf32>,
      %cst_50 = arith.constant 0.000000e+00 : f32
      %102 = vector.broadcast %cst_50 : f32 to vector<1x8xf32>
      %c0_51 = arith.constant 0 : index
      %c0_52 = arith.constant 0 : index
      %103 = vector.load %arg11[%c0_51, %c0_52] : memref<1x8xf32, #tpu.memory_space<vmem>>, vector<1x8xf32>
      tpu.vector_store %arg11[%c0_51, %c0_52], %102 {strides = array<i32>} : memref<1x8xf32, #tpu.memory_space<vmem>>, vector<1x8xf32>,
      %cst_53 = arith.constant 0.000000e+00 : f32
      %c0_54 = arith.constant 0 : index
      %104 = memref.load %arg12[%c0_54] : memref<2xf32, #tpu.memory_space<smem>>
      memref.store %cst_53, %arg12[%c0_54] : memref<2xf32, #tpu.memory_space<smem>>
      %cst_55 = arith.constant 0.000000e+00 : f32
      %c1_56 = arith.constant 1 : index
      %105 = memref.load %arg12[%c1_56] : memref<2xf32, #tpu.memory_space<smem>>
      memref.store %cst_55, %arg12[%c1_56] : memref<2xf32, #tpu.memory_space<smem>>
    } else {
    }
    %c0_1 = arith.constant 0 : index
    %c0_2 = arith.constant 0 : index
    %4 = vector.load %arg2[%c0_1, %c0_2] : memref<8x32xbf16, #tpu.memory_space<vmem>>, vector<8x32xbf16>
    %c0_3 = arith.constant 0 : index
    %c0_4 = arith.constant 0 : index
    %5 = vector.load %arg4[%c0_3, %c0_4] : memref<32x256xbf16, #tpu.memory_space<vmem>>, vector<32x256xbf16>
    %cst = arith.constant dense<0.000000e+00> : vector<8x256xf32>
    %6 = tpu.matmul %4, %5, %cst {dimension_numbers = #tpu.dot_dimension_numbers<[1], [0], [0], [1], [0, 0, 1, 1], [], []>} : vector<8x32xbf16>, vector<32x256xbf16>, vector<8x256xf32> -> vector<8x256xf32>
    %c0_5 = arith.constant 0 : index
    %c0_6 = arith.constant 0 : index
    %7 = vector.load %arg5[%c0_5, %c0_6] : memref<1x256xf32, #tpu.memory_space<vmem>>, vector<1x256xf32>
    %8 = vector.broadcast %7 : vector<1x256xf32> to vector<8x256xf32>
    %9 = arith.addf %6, %8 : vector<8x256xf32>
    %10 = arith.mulf %9, %9 : vector<8x256xf32>
    %cst_7 = arith.constant dense<0.000000e+00> : vector<8xf32>
    %11 = vector.multi_reduction <add>, %10, %cst_7 [1] : vector<8x256xf32> to vector<8xf32>
    %12 = vector.shape_cast %11 : vector<8xf32> to vector<8x1xf32>
    %13 = math.rsqrt %12 : vector<8x1xf32>
    %14 = vector.broadcast %0 : f32 to vector<8x1xf32>
    %15 = arith.mulf %13, %14 : vector<8x1xf32>
    %16 = vector.broadcast %15 : vector<8x1xf32> to vector<8x256xf32>
    %17 = arith.mulf %9, %16 : vector<8x256xf32>
    %18 = arith.truncf %17 : vector<8x256xf32> to vector<8x256xbf16>
    %c0_8 = arith.constant 0 : index
    %c0_9 = arith.constant 0 : index
    %19 = vector.load %arg9[%c0_8, %c0_9] : memref<256x8xbf16, #tpu.memory_space<vmem>>, vector<256x8xbf16>
    %cst_10 = arith.constant dense<0.000000e+00> : vector<8x8xf32>
    %20 = tpu.matmul %18, %19, %cst_10 {dimension_numbers = #tpu.dot_dimension_numbers<[1], [0], [0], [1], [0, 0, 1, 1], [], []>} : vector<8x256xbf16>, vector<256x8xbf16>, vector<8x8xf32> -> vector<8x8xf32>
    %cst_11 = arith.constant dense<0xFF800000> : vector<8xf32>
    %21 = vector.multi_reduction <maximumf>, %20, %cst_11 [1] : vector<8x8xf32> to vector<8xf32>
    %22 = vector.shape_cast %21 : vector<8xf32> to vector<8x1xf32>
    %23 = vector.broadcast %22 : vector<8x1xf32> to vector<8x8xf32>
    %24 = arith.subf %20, %23 : vector<8x8xf32>
    %25 = math.exp %24 : vector<8x8xf32>
    %cst_12 = arith.constant dense<0.000000e+00> : vector<8xf32>
    %26 = vector.multi_reduction <add>, %25, %cst_12 [1] : vector<8x8xf32> to vector<8xf32>
    %27 = vector.shape_cast %26 : vector<8xf32> to vector<8x1xf32>
    %28 = math.log %27 : vector<8x1xf32>
    %29 = arith.addf %28, %22 : vector<8x1xf32>
    %c0_13 = arith.constant 0 : index
    %30 = memref.load %arg12[%c0_13] : memref<2xf32, #tpu.memory_space<smem>>
    %31 = vector.shape_cast %29 : vector<8x1xf32> to vector<1x8x1xf32>
    %cst_14 = arith.constant dense<0.000000e+00> : vector<1xf32>
    %32 = vector.multi_reduction <add>, %31, %cst_14 [1, 2] : vector<1x8x1xf32> to vector<1xf32>
    %33 = vector.shape_cast %32 : vector<1xf32> to vector<1x1x1xf32>
    %34 = vector.extract %33[0, 0, 0] : f32 from vector<1x1x1xf32>
    %35 = arith.addf %30, %34 : f32
    %c0_15 = arith.constant 0 : index
    %36 = memref.load %arg12[%c0_15] : memref<2xf32, #tpu.memory_space<smem>>
    memref.store %35, %arg12[%c0_15] : memref<2xf32, #tpu.memory_space<smem>>
    %c8_i32 = arith.constant 8 : i32
    %37 = arith.muli %arg0, %c8_i32 : i32
    %38 = arith.index_cast %37 : i32 to index
    %c0_16 = arith.constant 0 : index
    %39 = vector.load %arg3[%38, %c0_16] : memref<8x32xbf16, #tpu.memory_space<vmem>>, vector<8x32xbf16>
    %c0_17 = arith.constant 0 : index
    %c0_18 = arith.constant 0 : index
    %40 = vector.load %arg6[%c0_17, %c0_18] : memref<32x256xbf16, #tpu.memory_space<vmem>>, vector<32x256xbf16>
    %cst_19 = arith.constant dense<0.000000e+00> : vector<8x256xf32>
    %41 = tpu.matmul %39, %40, %cst_19 {dimension_numbers = #tpu.dot_dimension_numbers<[1], [0], [0], [1], [0, 0, 1, 1], [], []>} : vector<8x32xbf16>, vector<32x256xbf16>, vector<8x256xf32> -> vector<8x256xf32>
    %c0_20 = arith.constant 0 : index
    %c0_21 = arith.constant 0 : index
    %42 = vector.load %arg7[%c0_20, %c0_21] : memref<1x256xf32, #tpu.memory_space<vmem>>, vector<1x256xf32>
    %43 = vector.broadcast %42 : vector<1x256xf32> to vector<8x256xf32>
    %44 = arith.addf %41, %43 : vector<8x256xf32>
    %45 = arith.mulf %44, %44 : vector<8x256xf32>
    %cst_22 = arith.constant dense<0.000000e+00> : vector<8xf32>
    %46 = vector.multi_reduction <add>, %45, %cst_22 [1] : vector<8x256xf32> to vector<8xf32>
    %47 = vector.shape_cast %46 : vector<8xf32> to vector<8x1xf32>
    %48 = math.rsqrt %47 : vector<8x1xf32>
    %49 = vector.broadcast %48 : vector<8x1xf32> to vector<8x256xf32>
    %50 = arith.mulf %44, %49 : vector<8x256xf32>
    %c1 = arith.constant 1 : index
    %51 = memref.load %arg12[%c1] : memref<2xf32, #tpu.memory_space<smem>>
    %52 = arith.mulf %17, %50 : vector<8x256xf32>
    %53 = vector.shape_cast %52 : vector<8x256xf32> to vector<1x8x256xf32>
    %cst_23 = arith.constant dense<0.000000e+00> : vector<1xf32>
    %54 = vector.multi_reduction <add>, %53, %cst_23 [1, 2] : vector<1x8x256xf32> to vector<1xf32>
    %55 = vector.shape_cast %54 : vector<1xf32> to vector<1x1x1xf32>
    %56 = vector.extract %55[0, 0, 0] : f32 from vector<1x1x1xf32>
    %57 = arith.addf %51, %56 : f32
    %c1_24 = arith.constant 1 : index
    %58 = memref.load %arg12[%c1_24] : memref<2xf32, #tpu.memory_space<smem>>
    memref.store %57, %arg12[%c1_24] : memref<2xf32, #tpu.memory_space<smem>>
    %cst_25 = arith.constant dense<0xFF800000> : vector<1xf32>
    %59 = vector.multi_reduction <maximumf>, %22, %cst_25 [0] : vector<8x1xf32> to vector<1xf32>
    %60 = vector.shape_cast %59 : vector<1xf32> to vector<1x1xf32>
    %61 = vector.broadcast %60 : vector<1x1xf32> to vector<8x1xf32>
    %62 = arith.subf %22, %61 : vector<8x1xf32>
    %63 = math.exp %62 : vector<8x1xf32>
    %64 = vector.broadcast %63 : vector<8x1xf32> to vector<8x8xf32>
    %65 = arith.mulf %25, %64 : vector<8x8xf32>
    %cst_26 = arith.constant dense<0.000000e+00> : vector<8xf32>
    %66 = vector.multi_reduction <add>, %65, %cst_26 [0] : vector<8x8xf32> to vector<8xf32>
    %67 = vector.shape_cast %66 : vector<8xf32> to vector<1x8xf32>
    %c0_27 = arith.constant 0 : index
    %c0_28 = arith.constant 0 : index
    %68 = vector.load %arg10[%c0_27, %c0_28] : memref<1x1xf32, #tpu.memory_space<vmem>>, vector<1x1xf32>
    %69 = arith.maximumf %68, %60 : vector<1x1xf32>
    %c0_29 = arith.constant 0 : index
    %c0_30 = arith.constant 0 : index
    %70 = vector.load %arg11[%c0_29, %c0_30] : memref<1x8xf32, #tpu.memory_space<vmem>>, vector<1x8xf32>
    %71 = arith.subf %68, %69 : vector<1x1xf32>
    %72 = math.exp %71 : vector<1x1xf32>
    %73 = vector.broadcast %72 : vector<1x1xf32> to vector<1x8xf32>
    %74 = arith.mulf %70, %73 : vector<1x8xf32>
    %75 = arith.subf %60, %69 : vector<1x1xf32>
    %76 = math.exp %75 : vector<1x1xf32>
    %77 = vector.broadcast %76 : vector<1x1xf32> to vector<1x8xf32>
    %78 = arith.mulf %67, %77 : vector<1x8xf32>
    %79 = arith.addf %74, %78 : vector<1x8xf32>
    %c0_31 = arith.constant 0 : index
    %c0_32 = arith.constant 0 : index
    %80 = vector.load %arg11[%c0_31, %c0_32] : memref<1x8xf32, #tpu.memory_space<vmem>>, vector<1x8xf32>
    tpu.vector_store %arg11[%c0_31, %c0_32], %79 {strides = array<i32>} : memref<1x8xf32, #tpu.memory_space<vmem>>, vector<1x8xf32>,
    %c0_33 = arith.constant 0 : index
    %c0_34 = arith.constant 0 : index
    %81 = vector.load %arg10[%c0_33, %c0_34] : memref<1x1xf32, #tpu.memory_space<vmem>>, vector<1x1xf32>
    tpu.vector_store %arg10[%c0_33, %c0_34], %69 {strides = array<i32>} : memref<1x1xf32, #tpu.memory_space<vmem>>, vector<1x1xf32>,
    %c0_i32_35 = arith.constant 0 : i32
    %82 = arith.cmpi eq, %arg0, %c0_i32_35 : i32
    %83 = arith.extui %82 : i1 to i32
    %c0_i32_36 = arith.constant 0 : i32
    %84 = arith.cmpi ne, %83, %c0_i32_36 : i32
    scf.if %84 {
      %c0_37 = arith.constant 0 : index
      %c0_38 = arith.constant 0 : index
      %85 = vector.load %arg11[%c0_37, %c0_38] : memref<1x8xf32, #tpu.memory_space<vmem>>, vector<1x8xf32>
      %86 = math.log %85 : vector<1x8xf32>
      %c0_39 = arith.constant 0 : index
      %c0_40 = arith.constant 0 : index
      %87 = vector.load %arg10[%c0_39, %c0_40] : memref<1x1xf32, #tpu.memory_space<vmem>>, vector<1x1xf32>
      %88 = vector.broadcast %87 : vector<1x1xf32> to vector<1x8xf32>
      %89 = arith.addf %86, %88 : vector<1x8xf32>
      %c0_41 = arith.constant 0 : index
      %90 = memref.load %arg12[%c0_41] : memref<2xf32, #tpu.memory_space<smem>>
      %91 = vector.shape_cast %89 : vector<1x8xf32> to vector<1x1x8xf32>
      %cst_42 = arith.constant dense<0.000000e+00> : vector<1xf32>
      %92 = vector.multi_reduction <add>, %91, %cst_42 [1, 2] : vector<1x1x8xf32> to vector<1xf32>
      %93 = vector.shape_cast %92 : vector<1xf32> to vector<1x1x1xf32>
      %94 = vector.extract %93[0, 0, 0] : f32 from vector<1x1x1xf32>
      %95 = arith.addf %90, %94 : f32
      %c1_43 = arith.constant 1 : index
      %96 = memref.load %arg12[%c1_43] : memref<2xf32, #tpu.memory_space<smem>>
      %cst_44 = arith.constant 2.000000e+00 : f32
      %97 = arith.mulf %cst_44, %96 : f32
      %98 = arith.subf %95, %97 : f32
      %cst_45 = arith.constant 1.600000e+01 : f32
      %99 = arith.divf %98, %cst_45 : f32
      %c0_46 = arith.constant 0 : index
      %c0_47 = arith.constant 0 : index
      %100 = memref.load %arg8[%c0_46, %c0_47] : memref<1x1xf32, #tpu.memory_space<smem>>
      memref.store %99, %arg8[%c0_46, %c0_47] : memref<1x1xf32, #tpu.memory_space<smem>>
    } else {
    }
    return
  }
  func.func @transform_0(%arg0: i32, %arg1: memref<1xf32, #tpu.memory_space<smem>>) -> (i32, i32) {
    %c0_i32 = arith.constant 0 : i32
    %c0_i32_0 = arith.constant 0 : i32
    return %arg0, %c0_i32 : i32, i32
  }
  func.func @transform_1(%arg0: i32, %arg1: memref<1xf32, #tpu.memory_space<smem>>) -> (i32, i32) {
    %c0_i32 = arith.constant 0 : i32
    %c0_i32_0 = arith.constant 0 : i32
    %c0_i32_1 = arith.constant 0 : i32
    return %c0_i32, %c0_i32_0 : i32, i32
  }
  func.func @transform_2(%arg0: i32, %arg1: memref<1xf32, #tpu.memory_space<smem>>) -> (i32, i32) {
    %c0_i32 = arith.constant 0 : i32
    %c0_i32_0 = arith.constant 0 : i32
    %c0_i32_1 = arith.constant 0 : i32
    return %c0_i32, %c0_i32_0 : i32, i32
  }
  func.func @transform_3(%arg0: i32, %arg1: memref<1xf32, #tpu.memory_space<smem>>) -> (i32, i32) {
    %c0_i32 = arith.constant 0 : i32
    %c0_i32_0 = arith.constant 0 : i32
    %c0_i32_1 = arith.constant 0 : i32
    return %c0_i32, %c0_i32_0 : i32, i32
  }
  func.func @transform_4(%arg0: i32, %arg1: memref<1xf32, #tpu.memory_space<smem>>) -> (i32, i32) {
    %c0_i32 = arith.constant 0 : i32
    %c0_i32_0 = arith.constant 0 : i32
    %c0_i32_1 = arith.constant 0 : i32
    return %c0_i32, %c0_i32_0 : i32, i32
  }
  func.func @transform_5(%arg0: i32, %arg1: memref<1xf32, #tpu.memory_space<smem>>) -> (i32, i32) {
    %c0_i32 = arith.constant 0 : i32
    %c0_i32_0 = arith.constant 0 : i32
    %c0_i32_1 = arith.constant 0 : i32
    return %c0_i32, %c0_i32_0 : i32, i32
  }
  func.func @transform_6(%arg0: i32, %arg1: memref<1xf32, #tpu.memory_space<smem>>) -> (i32, i32) {
    %c0_i32 = arith.constant 0 : i32
    %c0_i32_0 = arith.constant 0 : i32
    %c0_i32_1 = arith.constant 0 : i32
    return %c0_i32, %c0_i32_0 : i32, i32
  }
}

</mosaic_0001>

<bundles_post_ra>
// kernel: tpu_custom_call.1
= control target key start
LH: loop header
LB: loop body
LE: loop exit
PB: predicated region body
PF: predicated region fallthrough
CT: control target
= control target key end

     0   :  { %13 = vsyncpa [#allocation9], 0  ;;  %s1437_s0 = inlined_call_operand.<no memory space> [shape: f32[1], index: 0, kind: input, shape index: {}]   ;;  %s1438_s1 = inlined_call_operand.hbm [shape: bf16[8,32], index: 1, kind: input, shape index: {}]   ;;  %s1439_s2 = inlined_call_operand.hbm [shape: bf16[8,32], index: 2, kind: input, shape index: {}]   ;;  %s1440_s3 = inlined_call_operand.hbm [shape: bf16[32,256], index: 3, kind: input, shape index: {}]   ;;  %s1441_s4 = inlined_call_operand.vmem [shape: f32[1,256], index: 4, kind: input, shape index: {}]   ;;  %s1442_s5 = inlined_call_operand.hbm [shape: bf16[32,256], index: 5, kind: input, shape index: {}]   ;;  %s1443_s6 = inlined_call_operand.vmem [shape: f32[1,256], index: 6, kind: input, shape index: {}]   ;;  %s1444_s7 = inlined_call_operand.hbm [shape: f32[1,1], index: 7, kind: output, shape index: {}]  }
   0x1   :  { %14 = vsyncpa [#allocation12], 0 }
   0x2   :  { %15 = vsyncpa [#allocation15], 0 }
   0x3   :  { %16 = vsyncpa [#allocation10], 0  ;;  %s1273_s24 = smov [#allocation11]   ;;  %s1274_s26 = smov [#allocation8]  }
   0x4   :  { %s33_s25 = sshll.u32 %s1273_s24, 4  ;;  %s23_s27 = sshll.u32 %s1274_s26, 4  ;;  %s34_s25 = int_to_ptr.vmem [resolvable:$true] %s33_s25  ;;  %s24_s27 = int_to_ptr.vmem [resolvable:$true] %s23_s27 }
   0x5   :  { %s1185_s28 = scalar_lea.vmem %s34_s25, 64  ;;  %p1190_p1 = scmp.lt.s32.totalorder %s34_s25, %s34_s25 }
   0x6   :  { %p1186_p0 = scmp.ne.s32.totalorder %s34_s25, %s1185_s28  ;;  %p1191_p2 = scmp.lt.s32.totalorder %s1185_s28, %s1185_s28 }
   0x8   :  { %p1192_p3 = por %p1191_p2, %p1190_p1 }
   0xa   :  { %p1193_p4 = pnand %p1192_p3, %p1186_p0 }
   0xc   :  { %1196 = shalt.err (!%p1193_p4)
}
   0xd   :  { %36 = dma.hbm_to_vmem [thread:$0]  %s1439_s2, 64, %s34_s25, [#allocation12]  }
   0xe   :  { %s1205_s8 = scalar_lea.vmem %s24_s27, 64  ;;  %p1210_p6 = scmp.lt.s32.totalorder %s24_s27, %s24_s27 }
   0xf   :  { %p1206_p5 = scmp.ne.s32.totalorder %s24_s27, %s1205_s8  ;;  %p1211_p7 = scmp.lt.s32.totalorder %s1205_s8, %s1205_s8 }
  0x11   :  { %p1212_p8 = por %p1211_p7, %p1210_p6 }
  0x13   :  { %p1213_p9 = pnand %p1212_p8, %p1206_p5 }
  0x15   :  { %1216 = shalt.err (!%p1213_p9)
}
  0x16   :  { %26 = dma.hbm_to_vmem [thread:$0]  %s1438_s1, 64, %s24_s27, [#allocation9]  }
  0x17   :  { %s1275_s11 = smov [#allocation13]  }
  0x18   :  { %s42_s12 = sshll.u32 %s1275_s11, 4  ;;  %s43_s12 = int_to_ptr.vmem [resolvable:$true] %s42_s12 }
  0x19   :  { %s1225_s13 = scalar_lea.vmem %s43_s12, 512  ;;  %p1230_p11 = scmp.lt.s32.totalorder %s43_s12, %s43_s12 }
  0x1a   :  { %p1226_p10 = scmp.ne.s32.totalorder %s43_s12, %s1225_s13  ;;  %p1231_p12 = scmp.lt.s32.totalorder %s1225_s13, %s1225_s13 }
  0x1c   :  { %p1232_p13 = por %p1231_p12, %p1230_p11 }
  0x1e   :  { %p1233_p0 = pnand %p1232_p13, %p1226_p10 }
  0x20   :  { %1236 = shalt.err (!%p1233_p0)
}
  0x21   :  { %s1276_s2 = smov 128   ;;  %s1277_s14 = smov 8  }
  0x22   :  { %48 = dma.hbm_to_vmem [thread:$0]  %s1440_s3, 512, %s43_s12, [#allocation12], %s1276_s2, %s1276_s2, %s1277_s14  }
  0x23   :  { %s1278_s17 = smov [#allocation14]  }
  0x24   :  { %s56_s18 = sshll.u32 %s1278_s17, 4  ;;  %s57_s18 = int_to_ptr.vmem [resolvable:$true] %s56_s18 }
  0x25   :  { %s1245_s1 = scalar_lea.vmem %s57_s18, 512  ;;  %p1250_p2 = scmp.lt.s32.totalorder %s57_s18, %s57_s18 }
  0x26   :  { %p1246_p1 = scmp.ne.s32.totalorder %s57_s18, %s1245_s1  ;;  %p1251_p3 = scmp.lt.s32.totalorder %s1245_s1, %s1245_s1 }
  0x28   :  { %p1252_p4 = por %p1251_p3, %p1250_p2 }
  0x2a   :  { %p1253_p5 = pnand %p1252_p4, %p1246_p1 }
  0x2c   :  { %1256 = shalt.err (!%p1253_p5)
}
  0x2d   :  { %62 = dma.hbm_to_vmem [thread:$0]  %s1442_s5, 512, %s57_s18, [#allocation15], %s1276_s2, %s1276_s2, %s1277_s14  }
  0x2e   :  { %1265 = dma.done.wait [#allocation9], 64  }
  0x2f   :  { %1266 = vsyncadd [#allocation9], 4294967232 }
  0x30   :  { %1267 = dma.done.wait [#allocation12], 576  }
  0x31   :  { %1268 = vsyncadd [#allocation12], 4294966720 }
  0x32   :  { %1269 = dma.done.wait [#allocation15], 512  }
  0x33   :  { %1270 = vsyncadd [#allocation15], 4294966784  ;;  %v1279_v0 = vmov 0   ;;  %v1131_v1 = vld [vmem:[#allocation14 + $0x14] ss:$8 sps:$4 sm:$0xff]   ;;  %vm120_vm0 = vcmask 261120   ;;  %v90_v11 = vlaneseq  ;;  %v494_v45 = vstv %s1437_s0 }
  0x34   :  { %156 = vmatprep.mubr.bf16.mxu1 %v1279_v0  ;;  %1129 = vset.pattern.permute.xlu1 %v1279_v0  ;;  %v1133_v2 = vld [vmem:[#allocation14 + $0x10] ss:$8 sps:$4 sm:$0xff]   ;;  %v1134_v3 = vld [vmem:[#allocation14 + $0x4] ss:$8 sps:$4 sm:$0xff]   ;;  %v1136_v4 = vld [vmem:[#allocation14] ss:$8 sps:$4 sm:$0xff]  }
  0x35   :  { %136 = vmatprep.subr.bf16.mxu1 %v1131_v1  ;;  %v1139_v5 = vld [vmem:[#allocation13 + $0x14] ss:$8 sps:$4 sm:$0xff]   ;;  %v1137_v7 = vld [vmem:[#allocation13 + $0x10] ss:$8 sps:$4 sm:$0xff]   ;;  %v1142_v8 = vld [vmem:[#allocation13 + $0x4] ss:$8 sps:$4 sm:$0xff]  }
  0x36   :  { %137 = vmatpush1.bf16.msra.mxu1 %v1133_v2  ;;  %v83_v6 = vld [vmem:[#allocation11] sm:$0xf]  ;;  %v1140_v9 = vld [vmem:[#allocation13] ss:$8 sps:$4 sm:$0xff]   ;;  %v406_v10 = vld [vmem:[#allocation8] sm:$0xf] }
  0x37   :  { %138 = vmatprep.subr.bf16.mxu1 %v1134_v3  ;;  %v91_v12 = vshrl.u32 %v90_v11, 7  ;;  %v88_v14 = vld [vmem:[%s1443_s6] sm:$0x3]  ;;  %vm365_vm1 = vcmask 60416   ;;  %vm398_vm2 = vcmask 0   ;;  %vm668_vm3 = vcmask 64512  }
  0x38   :  { %v411_v21 = vld [vmem:[%s1441_s4] sm:$0x3]  ;;  %vm400_vm4 = vcmask 57344   ;;  %vm682_vm5 = vcmask 7168   ;;  %s1282_s8 = smov [#allocation16]  }
  0x39   :  { %v1341_v13 = vsub.s32 0, %v91_v12  ;;  %v1346_v15 = vsub.s32 1, %v91_v12 }
  0x3a   :  { %139 = vmatpush1.bf16.msra.mxu1 %v1136_v4 }
  0x3b   :  { %459 = vmatprep.subr.bf16.mxu1 %v1139_v5  ;;  %v93_v16 = vrot.slane %v88_v14, %v1341_v13  ;;  %v97_v17 = vrot.slane %v88_v14, %v1346_v15  ;;  %v416_v26 = vrot.slane %v411_v21, %v1341_v13  ;;  %v420_v29 = vrot.slane %v411_v21, %v1346_v15 }
  0x3d   :  { %916 = vmatmul.mubr.msk.bf16.vlgmr.msra.gmra.mxu1 %vm120_vm0, %v83_v6 }
  0x3e   :  { %460 = vmatpush1.bf16.msra.mxu1 %v1137_v7  ;;  %479 = vmatprep.mubr.bf16.mxu1 %v1279_v0 }
  0x3f   :  { %461 = vmatprep.subr.bf16.mxu1 %v1142_v8 }
  0x42   :  { %462 = vmatpush1.bf16.msra.mxu1 %v1140_v9 }
  0x43   :  { %753 = vmatprep.subr.bf16.mxu1 %v1131_v1 }
  0x45   :  { %953 = vmatmul.mubr.msk.bf16.vlgmr.msra.gmra.mxu1 %vm120_vm0, %v406_v10 }
  0x46   :  { %754 = vmatpush1.bf16.msra.mxu1 %v1133_v2  ;;  %773 = vmatprep.mubr.bf16.mxu1 %v1279_v0 }
  0x47   :  { %755 = vmatprep.subr.bf16.mxu1 %v1134_v3 }
  0x4a   :  { %756 = vmatpush1.bf16.msra.mxu1 %v1136_v4 }
  0xfd   :  { %v158_v18 = vpop.f32.mrf.mxu1 }
  0xfe   :  { %v159_v19 = vadd.f32 %v158_v18, %v93_v16 }
  0xff   :  { %v160_v20 = vpop.f32.mrf.mxu1 }
 0x100   :  { %v161_v22 = vadd.f32 %v160_v20, %v97_v17  ;;  %v165_v24 = vmul.f32 %v159_v19, %v159_v19 }
 0x101   :  { %v162_v23 = vpop.f32.mrf.mxu1 }
 0x102   :  { %v166_v25 = vmul.f32 %v161_v22, %v161_v22 }
 0x103   :  { %v163_v27 = vpop.f32.mrf.mxu1 }
 0x104   :  { %v167_v28 = vadd.f32 %v166_v25, %v165_v24 }
 0x105   :  { %v481_v30 = vpop.f32.mrf.mxu1 }
 0x106   :  { %168 = vadd.xlane.f32.xlu0 %v167_v28  ;;  %v1355_v31 = vadd.f32 %v481_v30, %v416_v26 }
 0x107   :  { %v483_v32 = vpop.f32.mrf.mxu1 }
 0x108   :  { %v484_v33 = vadd.f32 %v483_v32, %v420_v29  ;;  %v488_v34 = vmul.f32 %v1355_v31, %v1355_v31 }
 0x109   :  { %v485_v35 = vpop.f32.mrf.mxu1 }
 0x10a   :  { %v489_v36 = vmul.f32 %v484_v33, %v484_v33 }
 0x10b   :  { %v486_v37 = vpop.f32.mrf.mxu1 }
 0x10c   :  { %v490_v38 = vadd.f32 %v489_v36, %v488_v34 }
 0x10e   :  { %491 = vadd.xlane.f32.xlu1 %v490_v38 }
 0x18f   :  { %v169_v39 = vpop.xlane.xlu0 %168 }
 0x190   :  { %1159 = vrsqrt.f32 %v169_v39 }
 0x197   :  { %v492_v40 = vpop.xlane.xlu1 %491 }
 0x198   :  { %1161 = vrsqrt.f32 %v492_v40 }
 0x19d   :  { %v1160_v41 = vpop.eup %1159 }
 0x19e   :  { %v171_v42 = vmul.f32 %v1160_v41, %v159_v19  ;;  %v172_v43 = vmul.f32 %v1160_v41, %v161_v22 }
 0x1a0   :  { %v1047_v44 = vpack.i.bf16 %v171_v42, %v172_v43 }
 0x1a2   :  { %1048 = vxpose.xlu0.b32.start.end [1/1] (short) %v1047_v44, 128 }
 0x1a5   :  { %v1162_v46 = vpop.eup %1161 }
 0x1a6   :  { %v1362_v47 = vmul.f32 %v1162_v46, %v494_v45 }
 0x1a8   :  { %v1365_v48 = vmul.f32 %v1362_v47, %v484_v33 }
 0x1aa   :  { %v499_v49 = vpack.c.bf16 %v1365_v48, %v1365_v48 }
 0x1ac   :  { %660 = vmatprep.mubr.bf16.mxu0 %v499_v49 }
 0x1cb   :  { %1130 = vset.pattern.permute.xlu0 %v1279_v0 }
 0x21e   :  { %v1049_v50 = vpop.trf.xlu0 }
 0x21f   :  { %v1053_v51 = vunpack.i.h.bf16 %v1049_v50  ;;  %v1050_v52 = vunpack.i.l.bf16 %v1049_v50 }
 0x221   :  { %v977_v53 = vpack.c.bf16 %v1053_v51, %v1053_v51  ;;  %v993_v54 = vpack.c.bf16 %v1050_v52, %v1050_v52 }
 0x222   :  { %v1054_v55 = vpop.trf.xlu0 }
 0x223   :  { %366 = vst.msk [vmem:[#allocation2] sm:$0xf] %vm365_vm1, %v977_v53  ;;  %382 = vst.msk [vmem:[#allocation2 + $0x40] sm:$0xf] %vm365_vm1, %v993_v54  ;;  %v1058_v56 = vunpack.i.h.bf16 %v1054_v55  ;;  %v1055_v57 = vunpack.i.l.bf16 %v1054_v55 }
 0x225   :  { %v978_v58 = vpack.c.bf16 %v1058_v56, %v1058_v56  ;;  %v994_v59 = vpack.c.bf16 %v1055_v57, %v1055_v57 }
 0x226   :  { %v1059_v60 = vpop.trf.xlu0 }
 0x227   :  { %367 = vst.msk [vmem:[#allocation2 + $0x4] sm:$0xf] %vm365_vm1, %v978_v58  ;;  %383 = vst.msk [vmem:[#allocation2 + $0x44] sm:$0xf] %vm365_vm1, %v994_v59  ;;  %v1063_v61 = vunpack.i.h.bf16 %v1059_v60  ;;  %v1060_v62 = vunpack.i.l.bf16 %v1059_v60 }
 0x229   :  { %v979_v63 = vpack.c.bf16 %v1063_v61, %v1063_v61  ;;  %v995_v0 = vpack.c.bf16 %v1060_v62, %v1060_v62 }
 0x22a   :  { %v1064_v1 = vpop.trf.xlu0 }
 0x22b   :  { %368 = vst.msk [vmem:[#allocation2 + $0x8] sm:$0xf] %vm365_vm1, %v979_v63  ;;  %384 = vst.msk [vmem:[#allocation2 + $0x48] sm:$0xf] %vm365_vm1, %v995_v0  ;;  %v1068_v2 = vunpack.i.h.bf16 %v1064_v1  ;;  %v1065_v3 = vunpack.i.l.bf16 %v1064_v1 }
 0x22d   :  { %v980_v4 = vpack.c.bf16 %v1068_v2, %v1068_v2  ;;  %v996_v5 = vpack.c.bf16 %v1065_v3, %v1065_v3 }
 0x22e   :  { %v1069_v6 = vpop.trf.xlu0 }
 0x22f   :  { %369 = vst.msk [vmem:[#allocation2 + $0xc] sm:$0xf] %vm365_vm1, %v980_v4  ;;  %385 = vst.msk [vmem:[#allocation2 + $0x4c] sm:$0xf] %vm365_vm1, %v996_v5  ;;  %v1073_v7 = vunpack.i.h.bf16 %v1069_v6  ;;  %v1070_v8 = vunpack.i.l.bf16 %v1069_v6 }
 0x231   :  { %v981_v9 = vpack.c.bf16 %v1073_v7, %v1073_v7  ;;  %v997_v10 = vpack.c.bf16 %v1070_v8, %v1070_v8 }
 0x232   :  { %v1074_v11 = vpop.trf.xlu0 }
 0x233   :  { %370 = vst.msk [vmem:[#allocation2 + $0x10] sm:$0xf] %vm365_vm1, %v981_v9  ;;  %386 = vst.msk [vmem:[#allocation2 + $0x50] sm:$0xf] %vm365_vm1, %v997_v10  ;;  %v1078_v12 = vunpack.i.h.bf16 %v1074_v11  ;;  %v1075_v14 = vunpack.i.l.bf16 %v1074_v11 }
 0x235   :  { %v982_v16 = vpack.c.bf16 %v1078_v12, %v1078_v12  ;;  %v998_v17 = vpack.c.bf16 %v1075_v14, %v1075_v14 }
 0x236   :  { %v1079_v18 = vpop.trf.xlu0 }
 0x237   :  { %371 = vst.msk [vmem:[#allocation2 + $0x14] sm:$0xf] %vm365_vm1, %v982_v16  ;;  %387 = vst.msk [vmem:[#allocation2 + $0x54] sm:$0xf] %vm365_vm1, %v998_v17  ;;  %v1083_v19 = vunpack.i.h.bf16 %v1079_v18  ;;  %v1080_v20 = vunpack.i.l.bf16 %v1079_v18 }
 0x239   :  { %v983_v21 = vpack.c.bf16 %v1083_v19, %v1083_v19  ;;  %v999_v22 = vpack.c.bf16 %v1080_v20, %v1080_v20 }
 0x23a   :  { %v1084_v23 = vpop.trf.xlu0 }
 0x23b   :  { %372 = vst.msk [vmem:[#allocation2 + $0x18] sm:$0xf] %vm365_vm1, %v983_v21  ;;  %388 = vst.msk [vmem:[#allocation2 + $0x58] sm:$0xf] %vm365_vm1, %v999_v22  ;;  %v1088_v24 = vunpack.i.h.bf16 %v1084_v23  ;;  %v1085_v25 = vunpack.i.l.bf16 %v1084_v23  ;;  %v1155_v21 = vld [vmem:[#allocation2 + $0x48] sm:$0xff]   ;;  %v1157_v23 = vld [vmem:[#allocation2 + $0x40] sm:$0xff]  }
 0x23c   :  { %v1156_v22 = vld [vmem:[#allocation2 + $0x8] sm:$0xff]  }
 0x23d   :  { %v984_v26 = vpack.c.bf16 %v1088_v24, %v1088_v24  ;;  %v1000_v27 = vpack.c.bf16 %v1085_v25, %v1085_v25  ;;  %v1404_v24 = vmul.f32 %v1362_v47, %v1355_v31  ;;  %v1158_v25 = vld [vmem:[#allocation2] sm:$0xff]  }
 0x23e   :  { %v1089_v28 = vpop.trf.xlu0  ;;  %v1153_v19 = vld [vmem:[#allocation2 + $0x50] sm:$0xff]  }
 0x23f   :  { %373 = vst.msk [vmem:[#allocation2 + $0x1c] sm:$0xf] %vm365_vm1, %v984_v26  ;;  %389 = vst.msk [vmem:[#allocation2 + $0x5c] sm:$0xf] %vm365_vm1, %v1000_v27  ;;  %v1093_v29 = vunpack.i.h.bf16 %v1089_v28  ;;  %v1090_v30 = vunpack.i.l.bf16 %v1089_v28  ;;  %v1154_v20 = vld [vmem:[#allocation2 + $0x10] sm:$0xff]   ;;  %v498_v26 = vpack.c.bf16 %v1404_v24, %v1404_v24  ;;  %v1280_v28 = vmov -inf  }
 0x240   :  { %v701_v27 = vld [vmem:[#allocation11] sm:$0xf]  ;;  %399 = vst.msk [vmem:[#allocation3] sm:$0x1] %vm398_vm2, %v1280_v28 }
 0x241   :  { %v985_v32 = vpack.c.bf16 %v1093_v29, %v1093_v29  ;;  %v1001_v33 = vpack.c.bf16 %v1090_v30, %v1090_v30  ;;  %974 = vmatmul.mubr.msk.bf16.vlgmr.msra.gmra.mxu1 %vm120_vm0, %v701_v27 }
 0x242   :  { %v1094_v34 = vpop.trf.xlu0 }
 0x243   :  { %374 = vst.msk [vmem:[#allocation2 + $0x20] sm:$0xf] %vm365_vm1, %v985_v32  ;;  %390 = vst.msk [vmem:[#allocation2 + $0x60] sm:$0xf] %vm365_vm1, %v1001_v33  ;;  %v1098_v35 = vunpack.i.h.bf16 %v1094_v34  ;;  %v1095_v36 = vunpack.i.l.bf16 %v1094_v34 }
 0x245   :  { %v986_v37 = vpack.c.bf16 %v1098_v35, %v1098_v35  ;;  %v1002_v38 = vpack.c.bf16 %v1095_v36, %v1095_v36 }
 0x246   :  { %v1099_v39 = vpop.trf.xlu0  ;;  %v1151_v17 = vld [vmem:[#allocation2 + $0x58] sm:$0xff]  }
 0x247   :  { %375 = vst.msk [vmem:[#allocation2 + $0x24] sm:$0xf] %vm365_vm1, %v986_v37  ;;  %391 = vst.msk [vmem:[#allocation2 + $0x64] sm:$0xf] %vm365_vm1, %v1002_v38  ;;  %v1103_v40 = vunpack.i.h.bf16 %v1099_v39  ;;  %v1100_v41 = vunpack.i.l.bf16 %v1099_v39  ;;  %v1152_v18 = vld [vmem:[#allocation2 + $0x18] sm:$0xff]   ;;  %v1281_v38 = vmov 0.0  }
 0x248   :  { %401 = vst.msk [vmem:[#allocation4] sm:$0x1] %vm400_vm4, %v1281_v38 }
 0x249   :  { %v987_v42 = vpack.c.bf16 %v1103_v40, %v1103_v40  ;;  %v1003_v43 = vpack.c.bf16 %v1100_v41, %v1100_v41 }
 0x24a   :  { %v1104_v44 = vpop.trf.xlu0 }
 0x24b   :  { %376 = vst.msk [vmem:[#allocation2 + $0x28] sm:$0xf] %vm365_vm1, %v987_v42  ;;  %392 = vst.msk [vmem:[#allocation2 + $0x68] sm:$0xf] %vm365_vm1, %v1003_v43  ;;  %v1108_v45 = vunpack.i.h.bf16 %v1104_v44  ;;  %v1105_v46 = vunpack.i.l.bf16 %v1104_v44 }
 0x24d   :  { %v988_v49 = vpack.c.bf16 %v1108_v45, %v1108_v45  ;;  %v1004_v50 = vpack.c.bf16 %v1105_v46, %v1105_v46 }
 0x24e   :  { %v1109_v51 = vpop.trf.xlu0  ;;  %v1149_v14 = vld [vmem:[#allocation2 + $0x60] sm:$0xff]  }
 0x24f   :  { %377 = vst.msk [vmem:[#allocation2 + $0x2c] sm:$0xf] %vm365_vm1, %v988_v49  ;;  %393 = vst.msk [vmem:[#allocation2 + $0x6c] sm:$0xf] %vm365_vm1, %v1004_v50  ;;  %v1113_v52 = vunpack.i.h.bf16 %v1109_v51  ;;  %v1110_v53 = vunpack.i.l.bf16 %v1109_v51  ;;  %v1150_v16 = vld [vmem:[#allocation2 + $0x20] sm:$0xff]  }
 0x250   :  { %v823_v49 = vld [vmem:[#allocation3] sm:$0x1] }
 0x251   :  { %v989_v54 = vpack.c.bf16 %v1113_v52, %v1113_v52  ;;  %v1005_v55 = vpack.c.bf16 %v1110_v53, %v1110_v53 }
 0x252   :  { %v1114_v56 = vpop.trf.xlu0 }
 0x253   :  { %378 = vst.msk [vmem:[#allocation2 + $0x30] sm:$0xf] %vm365_vm1, %v989_v54  ;;  %394 = vst.msk [vmem:[#allocation2 + $0x70] sm:$0xf] %vm365_vm1, %v1005_v55  ;;  %v1118_v57 = vunpack.i.h.bf16 %v1114_v56  ;;  %v1115_v58 = vunpack.i.l.bf16 %v1114_v56 }
 0x255   :  { %v990_v59 = vpack.c.bf16 %v1118_v57, %v1118_v57  ;;  %v1006_v60 = vpack.c.bf16 %v1115_v58, %v1115_v58 }
 0x256   :  { %v1119_v61 = vpop.trf.xlu0  ;;  %v1147_v11 = vld [vmem:[#allocation2 + $0x68] sm:$0xff]  }
 0x257   :  { %379 = vst.msk [vmem:[#allocation2 + $0x34] sm:$0xf] %vm365_vm1, %v990_v59  ;;  %395 = vst.msk [vmem:[#allocation2 + $0x74] sm:$0xf] %vm365_vm1, %v1006_v60  ;;  %v1123_v62 = vunpack.i.h.bf16 %v1119_v61  ;;  %v1120_v63 = vunpack.i.l.bf16 %v1119_v61  ;;  %v1148_v12 = vld [vmem:[#allocation2 + $0x28] sm:$0xff]  }
 0x259   :  { %v991_v0 = vpack.c.bf16 %v1123_v62, %v1123_v62  ;;  %v1007_v1 = vpack.c.bf16 %v1120_v63, %v1120_v63 }
 0x25a   :  { %v1124_v2 = vpop.trf.xlu0 }
 0x25b   :  { %380 = vst.msk [vmem:[#allocation2 + $0x38] sm:$0xf] %vm365_vm1, %v991_v0  ;;  %396 = vst.msk [vmem:[#allocation2 + $0x78] sm:$0xf] %vm365_vm1, %v1007_v1  ;;  %v1128_v3 = vunpack.i.h.bf16 %v1124_v2  ;;  %v1125_v4 = vunpack.i.l.bf16 %v1124_v2  ;;  %v706_v0 = vld [vmem:[%s1443_s6] sm:$0x3] }
 0x25c   :  { %v711_v1 = vrot.slane %v706_v0, %v1341_v13  ;;  %v715_v2 = vrot.slane %v706_v0, %v1346_v15 }
 0x25d   :  { %v992_v5 = vpack.c.bf16 %v1128_v3, %v1128_v3  ;;  %v1008_v6 = vpack.c.bf16 %v1125_v4, %v1125_v4 }
 0x25e   :  { %v1145_v9 = vld [vmem:[#allocation2 + $0x70] sm:$0xff]  }
 0x25f   :  { %381 = vst.msk [vmem:[#allocation2 + $0x3c] sm:$0xf] %vm365_vm1, %v992_v5  ;;  %397 = vst.msk [vmem:[#allocation2 + $0x7c] sm:$0xf] %vm365_vm1, %v1008_v6  ;;  %v1146_v10 = vld [vmem:[#allocation2 + $0x30] sm:$0xff]  }
 0x266   :  { %v1143_v7 = vld [vmem:[#allocation2 + $0x78] sm:$0xff]  }
 0x267   :  { %v1144_v8 = vld [vmem:[#allocation2 + $0x38] sm:$0xff]   ;;  %1009 = vmatprep.subr.bf16.mxu0 %v1143_v7 }
 0x268   :  { %1010 = vmatpush3.bf16.msra.mxu0 %v1144_v8 }
 0x269   :  { %1011 = vmatprep.subr.bf16.mxu0 %v1145_v9 }
 0x26c   :  { %1012 = vmatpush3.bf16.msra.mxu0 %v1146_v10 }
 0x26d   :  { %1013 = vmatprep.subr.bf16.mxu0 %v1147_v11 }
 0x270   :  { %1014 = vmatpush3.bf16.msra.mxu0 %v1148_v12 }
 0x271   :  { %1015 = vmatprep.subr.bf16.mxu0 %v1149_v14 }
 0x274   :  { %1016 = vmatpush3.bf16.msra.mxu0 %v1150_v16 }
 0x275   :  { %1017 = vmatprep.subr.bf16.mxu0 %v1151_v17 }
 0x278   :  { %1018 = vmatpush3.bf16.msra.mxu0 %v1152_v18 }
 0x279   :  { %1019 = vmatprep.subr.bf16.mxu0 %v1153_v19  ;;  %v825_v19 = vld [vmem:[#allocation4] sm:$0x1] }
 0x27c   :  { %1020 = vmatpush3.bf16.msra.mxu0 %v1154_v20 }
 0x27d   :  { %1021 = vmatprep.subr.bf16.mxu0 %v1155_v21 }
 0x280   :  { %1022 = vmatpush3.bf16.msra.mxu0 %v1156_v22 }
 0x281   :  { %1023 = vmatprep.subr.bf16.mxu0 %v1157_v23 }
 0x284   :  { %1024 = vmatpush3.bf16.msra.mxu0 %v1158_v25 }
 0x287   :  { %661 = vmatmul.mubr.bf16.vlgmr.msra.gmra.mxu0 %v498_v26 }
 0x301   :  { %v775_v34 = vpop.f32.mrf.mxu1 }
 0x302   :  { %v776_v3 = vadd.f32 %v775_v34, %v711_v1 }
 0x303   :  { %v777_v35 = vpop.f32.mrf.mxu1 }
 0x304   :  { %v778_v4 = vadd.f32 %v777_v35, %v715_v2  ;;  %v782_v5 = vmul.f32 %v776_v3, %v776_v3 }
 0x305   :  { %v779_v36 = vpop.f32.mrf.mxu1 }
 0x306   :  { %v783_v6 = vmul.f32 %v778_v4, %v778_v4 }
 0x307   :  { %v780_v37 = vpop.f32.mrf.mxu1 }
 0x308   :  { %v784_v7 = vadd.f32 %v783_v6, %v782_v5 }
 0x347   :  { %v1025_v29 = vpop.f32.mrf.mxu0 }
 0x349   :  { %v1026_v30 = vpop.f32.mrf.mxu0 }
 0x34a   :  { %v1027_v32 = vadd.f32 %v1026_v30, %v1025_v29 }
 0x34b   :  { %v1028_v33 = vpop.f32.mrf.mxu0 }
 0x34c   :  { %v669_v31 = vsel %vm668_vm3, %v1027_v32, -inf }
 0x34d   :  { %v1029_v47 = vpop.f32.mrf.mxu0  ;;  %670 = vmax.xlane.f32.xlu1 %v669_v31 }
 0x3d6   :  { %v1412_v39 = vpop.xlane.xlu1 %670 }
 0x3d7   :  { %v672_v40 = vsub.f32 %v1027_v32, %v1412_v39  ;;  %v806_v41 = vrot.slane %v1412_v39, 4 }
 0x3d9   :  { %v673_v42 = vmul.f32 1.442695, %v672_v40  ;;  %v807_v43 = vmax.f32 %v1412_v39, %v806_v41 }
 0x3db   :  { %1163 = vpow2.f32 %v673_v42  ;;  %v808_v44 = vrot.slane %v807_v43, 2 }
 0x3dd   :  { %v809_v45 = vmax.f32 %v807_v43, %v808_v44 }
 0x3df   :  { %v810_v46 = vrot.slane %v809_v45, 1 }
 0x3e1   :  { %v811_v50 = vmax.f32 %v809_v45, %v810_v46 }
 0x3e3   :  { %v812_v51 = vsub.f32 %v1412_v39, %v811_v50  ;;  %v824_v52 = vmax.f32 %v823_v49, %v811_v50 }
 0x3e5   :  { %v813_v53 = vmul.f32 1.442695, %v812_v51  ;;  %v826_v54 = vsub.f32 %v823_v49, %v824_v52  ;;  %v839_v55 = vsub.f32 %v811_v50, %v824_v52  ;;  %856 = vst.msk [vmem:[#allocation3] sm:$0x1] %vm398_vm2, %v824_v52 }
 0x3e7   :  { %1165 = vpow2.f32 %v813_v53  ;;  %v827_v56 = vmul.f32 1.442695, %v826_v54  ;;  %v840_v58 = vmul.f32 1.442695, %v839_v55 }
 0x3e8   :  { %v1164_v57 = vpop.eup %1163 }
 0x3e9   :  { %1167 = vpow2.f32 %v827_v56  ;;  %v675_v59 = vsel %vm668_vm3, %v1164_v57, 0.0 }
 0x3ea   :  { %676 = vadd.xlane.f32.xlu0 %v675_v59  ;;  %1169 = vpow2.f32 %v840_v58 }
 0x3ec   :  { %v863_v8 = vld [vmem:[#allocation3] sm:$0x1] }
 0x3f4   :  { %v1166_v60 = vpop.eup %1165 }
 0x3f5   :  { %v815_v61 = vmul.f32 %v1166_v60, %v1164_v57 }
 0x3f6   :  { %v1168_v62 = vpop.eup %1167 }
 0x3f7   :  { %831 = vperm.xlu1 %1129, %v1168_v62   ;;  %v1170_v63 = vpop.eup %1169  ;;  %v816_v9 = vsel %vm668_vm3, %v815_v61, 0.0 }
 0x3f8   :  { %v817_v10 = vrot.slane %v816_v9, 4 }
 0x3fa   :  { %v818_v11 = vadd.f32 %v817_v10, %v816_v9 }
 0x3fb   :  { %844 = vperm.xlu1 %1129, %v1170_v63  }
 0x3fc   :  { %v819_v12 = vrot.slane %v818_v11, 2 }
 0x3fe   :  { %v820_v14 = vadd.f32 %v819_v12, %v818_v11 }
 0x400   :  { %v821_v17 = vrot.slane %v820_v14, 1 }
 0x402   :  { %v822_v20 = vadd.f32 %v821_v17, %v820_v14 }
 0x41f   :  { %785 = vadd.xlane.f32.xlu1 %v784_v7 }
 0x430   :  { %866 = vperm.xlu1 %1129, %v863_v8  }
 0x472   :  { %v832_v16 = vpop.permute.xlu1 %831 }
 0x473   :  { %v837_v18 = vrot.slane %v832_v16, %v1341_v13  ;;  %v677_v26 = vpop.xlane.xlu0 %676 }
 0x474   :  { %1171 = vlog2.f32 %v677_v26 }
 0x475   :  { %v838_v22 = vmul.f32 %v837_v18, %v825_v19 }
 0x476   :  { %v845_v15 = vpop.permute.xlu1 %844 }
 0x477   :  { %v850_v21 = vrot.slane %v845_v15, %v1341_v13 }
 0x479   :  { %v851_v23 = vmul.f32 %v850_v21, %v822_v20 }
 0x47b   :  { %v852_v25 = vadd.f32 %v851_v23, %v838_v22 }
 0x47d   :  { %854 = vst.msk [vmem:[#allocation4] sm:$0x1] %vm400_vm4, %v852_v25 }
 0x481   :  { %v1172_v29 = vpop.eup %1171 }
 0x482   :  { %v679_v31 = vmul.f32 0.6931472, %v1172_v29 }
 0x484   :  { %v860_v28 = vld [vmem:[#allocation4] sm:$0x1]  ;;  %v680_v40 = vadd.f32 %v679_v31, %v1412_v39 }
 0x486   :  { %v683_v42 = vsel %vm682_vm5, %v680_v40, 0.0 }
 0x4a8   :  { %v786_v27 = vpop.xlane.xlu1 %785 }
 0x4a9   :  { %1173 = vrsqrt.f32 %v786_v27 }
 0x4aa   :  { %1175 = vlog2.f32 %v860_v28 }
 0x4ac   :  { %v867_v47 = vpop.permute.xlu1 %866 }
 0x4ad   :  { %v872_v38 = vrot.slane %v867_v47, %v1341_v13 }
 0x4b6   :  { %v1174_v30 = vpop.eup %1173 }
 0x4b7   :  { %v788_v32 = vmul.f32 %v1174_v30, %v776_v3  ;;  %v789_v33 = vmul.f32 %v1174_v30, %v778_v4  ;;  %v1176_v36 = vpop.eup %1175 }
 0x4b8   :  { %v862_v41 = vmul.f32 0.6931472, %v1176_v36 }
 0x4b9   :  { %v791_v34 = vmul.f32 %v788_v32, %v1404_v24  ;;  %v792_v35 = vmul.f32 %v789_v33, %v1365_v48 }
 0x4ba   :  { %v873_v43 = vadd.f32 %v872_v38, %v862_v41 }
 0x4bb   :  { %v793_v37 = vadd.f32 %v792_v35, %v791_v34 }
 0x4bc   :  { %v875_v44 = vsel %vm400_vm4, %v873_v43, 0.0 }
 0x4bd   :  { %794 = vadd.xlane.f32.xlu1 %v793_v37 }
 0x4c1   :  { %684 = vadd.xlane.f32.xlu1 %v683_v42 }
 0x4c5   :  { %876 = vadd.xlane.f32.xlu1 %v875_v44 }
 0x546   :  { %v795_v45 = vpop.xlane.xlu1 %794 }
 0x547   :  { %v796_v46 = vrot.slane %v795_v45, 4 }
 0x549   :  { %v797_v24 = vadd.f32 %v796_v46, %v795_v45 }
 0x54a   :  { %v685_v49 = vpop.xlane.xlu1 %684 }
 0x54b   :  { %v798_v48 = vrot.slane %v797_v24, 2  ;;  %v686_v50 = vrot.slane %v685_v49, 4 }
 0x54d   :  { %v687_v51 = vadd.f32 %v686_v50, %v685_v49  ;;  %v799_v13 = vadd.f32 %v798_v48, %v797_v24 }
 0x54e   :  { %v877_v52 = vpop.xlane.xlu1 %876 }
 0x54f   :  { %v688_v53 = vrot.slane %v687_v51, 2  ;;  %v878_v39 = vrot.slane %v877_v52, 4  ;;  %v800_v56 = vrot.slane %v799_v13, 1 }
 0x551   :  { %v879_v54 = vadd.f32 %v878_v39, %v877_v52  ;;  %v689_v55 = vadd.f32 %v688_v53, %v687_v51  ;;  %v801_v61 = vadd.f32 %v800_v56, %v799_v13 }
 0x553   :  { %v880_v57 = vrot.slane %v879_v54, 2  ;;  %v690_v58 = vrot.slane %v689_v55, 1 }
 0x555   :  { %v881_v59 = vadd.f32 %v880_v57, %v879_v54  ;;  %v691_v60 = vadd.f32 %v690_v58, %v689_v55 }
 0x557   :  { %1031 = vpush %v691_v60  ;;  %v882_v62 = vrot.slane %v881_v59, 1 }
 0x558   :  { %1033 = vpush %v801_v61 }
 0x559   :  { %v883_v63 = vadd.f32 %v882_v62, %v881_v59 }
 0x55b   :  { %1035 = vpush %v883_v63 }
 0x588   :  { %s1032_s6 = spop %1031 }
 0x589   :  { %s1034_s25 = spop %1033 }
 0x58a   :  { %s887_s27 = smul.f32 2.0, %s1034_s25 }
 0x58c   :  { %s1036_s26 = spop %1035 }
 0x58d   :  { %s885_s28 = sadd.f32 %s1036_s26, %s1032_s6 }
 0x58f   :  { %s888_s29 = ssub.f32 %s885_s28, %s887_s27 }
 0x591   :  { %s891_s30 = smul.f32 0.0625, %s888_s29 }
 0x593   :  { %893 = sst [smem:[#allocation16]] %s891_s30 }
 0x594   :  { %901 = dma.smem_to_hbm %s1282_s8, 16, %s1444_s7, [#allocation10]  }
 0x595   :  { %1271 = dma.done.wait [#allocation10], 16  }
 0x596   :  { %1272 = vsyncadd [#allocation10], 4294967280 }
 0x597   :  { %905 = sfence }
 0x598   :  { %906 = vsyncpa [#allocation9], 1 }
 0x599   :  { %907 = vsyncpa [#allocation12], 1 }
 0x59a   :  { %908 = vsyncpa [#allocation15], 1 }
 0x59b   :  { %909 = vsyncpa [#allocation10], 1 }

</bundles_post_ra>
